<compile_context>
chip_gen: v7x
topology: tpu7x:2x2x1
jax: 0.10.0
libtpu: 0.0.40
codegen_flags: <defaults>
</compile_context>

<pallas_src>
import functools

import jax
import jax.numpy as jnp
from jax.experimental import pallas as pl
from jax.experimental.pallas import tpu as pltpu


def _round_up(a: int, b: int) -> int:
    return (a + b - 1) // b * b


def _spatial_attn_kernel(x_ref, wt_ref, b_ref, o_ref):
    # x_ref : [B, tt, C]  time-tile of the permuted input
    # wt_ref: [C, H]      transposed Linear weight, resident across the grid
    # b_ref : [1, H]      Linear bias (already f32), resident across the grid
    # o_ref : [B, tt, H]  output tile (still in permuted [B, T, H] layout)
    B = x_ref.shape[0]
    wt = wt_ref[...].astype(jnp.float32)
    bias = b_ref[...]                                   # [1, H], f32 (cast hoisted to wrapper)

    # Per-batch 2-D MXU matmuls (B is a small, static block dim -> unrolled).
    xs = [x_ref[b].astype(jnp.float32) for b in range(B)]         # each [tt, C]
    logits = [jnp.dot(xb, wt, preferred_element_type=jnp.float32) + bias
              for xb in xs]                                        # each [tt, H]

    # Legacy F.softmax(x) with no dim on a 3-D tensor normalizes over dim 0,
    # i.e. across the batch axis for every (time, hidden) position.
    m = functools.reduce(jnp.maximum, logits)                      # [tt, H]
    es = [jnp.exp(l - m) for l in logits]
    inv_denom = 1.0 / functools.reduce(jnp.add, es)                # [tt, H]

    for b in range(B):
        # Elementwise multiply requires H == C (checked in the wrapper).
        o_ref[b] = (xs[b] * (es[b] * inv_denom)).astype(o_ref.dtype)


@functools.partial(jax.jit, static_argnames=("tt",))
def spatial_attn(x, weight, bias, *, tt=2048):
    """SpatialAttn forward.

    x      : [B, C, T]  (batch, channel_size, time)
    weight : [H, C]     PyTorch nn.Linear weight layout
    bias   : [H]
    returns: [B, C, T]  (H must equal C, as required by the elementwise multiply)
    """
    B, C, T = x.shape
    H = weight.shape[0]
    assert weight.shape == (H, C), "weight must be [hidden_size, channel_size]"
    assert bias.shape == (H,)
    assert H == C, "forward()'s elementwise multiply requires hidden_size == channel_size"

    # permute(0, 2, 1): layout plumbing stays in the wrapper.
    xp = jnp.transpose(x, (0, 2, 1))                               # [B, T, C]

    # Time-tile sizing: large tiles amortize per-step pipeline overhead (the kernel
    # is HBM-bound), rounded to the sublane quantum and clamped to the time extent.
    tt_eff = _round_up(max(8, min(tt, _round_up(T, 8))), 8)
    # Keep >= 2 grid steps when the time axis is big enough so the "parallel"
    # grid axis can be sharded across both v7x TensorCores.
    if tt_eff >= T and T > 16:
        tt_eff = _round_up((T + 1) // 2, 8)
    T_pad = _round_up(T, tt_eff)
    grid = (T_pad // tt_eff,)

    if T_pad != T:
        # Zero-pad the time axis: padded rows give zero output (x == 0) and the
        # softmax only couples the batch axis, so real rows are unaffected.
        xp = jnp.pad(xp, ((0, 0), (0, T_pad - T), (0, 0)))

    wt = weight.T                                                  # [C, H]
    b2 = bias.astype(jnp.float32).reshape(1, H)                    # hoisted f32 cast

    itemsize = int(jnp.dtype(x.dtype).itemsize)
    blk_bytes = B * tt_eff * (C + H) * itemsize                    # one in-tile + one out-tile
    resident = C * H * int(jnp.dtype(weight.dtype).itemsize) + H * 4
    vmem_limit = int(max(32 * 1024 * 1024, 3 * blk_bytes + resident + (1 << 20)))

    cost = pl.CostEstimate(
        flops=int(2 * B * T_pad * C * H),
        transcendentals=int(B * T_pad * H),
        bytes_accessed=int(B * T_pad * (C + H) * itemsize + resident),
    )

    out_p = pl.pallas_call(
        _spatial_attn_kernel,
        out_shape=jax.ShapeDtypeStruct((B, T_pad, H), x.dtype),
        grid_spec=pltpu.PrefetchScalarGridSpec(
            num_scalar_prefetch=0,
            grid=grid,
            in_specs=[
                pl.BlockSpec((B, tt_eff, C), lambda i: (0, i, 0)),  # x time-tile
                pl.BlockSpec((C, H), lambda i: (0, 0)),             # W.T, resident
                pl.BlockSpec((1, H), lambda i: (0, 0)),             # bias, resident
            ],
            out_specs=pl.BlockSpec((B, tt_eff, H), lambda i: (0, i, 0)),
        ),
        compiler_params=pltpu.CompilerParams(
            dimension_semantics=("parallel",),
            vmem_limit_bytes=vmem_limit,
        ),
        cost_estimate=cost,
    )(xp, wt, b2)

    out_p = out_p[:, :T, :]                                        # drop time padding
    return jnp.transpose(out_p, (0, 2, 1))                         # permute back -> [B, C, T]


def _reference(x, weight, bias):
    xp = jnp.transpose(x, (0, 2, 1)).astype(jnp.float32)           # [B, T, C]
    logits = jnp.einsum("btc,hc->bth", xp, weight.astype(jnp.float32)) + bias.astype(jnp.float32)
    attn = jax.nn.softmax(logits, axis=0)   # F.softmax(3-D, dim=None) => dim 0 (batch)
    out = (xp * attn).astype(x.dtype)
    return jnp.transpose(out, (0, 2, 1))


if __name__ == "__main__":
    # Small shapes consistent with the module: weighted_features is
    # [batch, channel_size, time]; hidden_size == channel_size is required by the
    # elementwise multiply in forward().
    batch, channel_size, time_steps = 2, 16, 20
    hidden_size = channel_size

    key = jax.random.PRNGKey(0)
    kx, kw, kb = jax.random.split(key, 3)
    x = jax.random.normal(kx, (batch, channel_size, time_steps), dtype=jnp.float32)
    weight = jax.random.normal(kw, (hidden_size, channel_size), dtype=jnp.float32) * 0.1
    bias = jax.random.normal(kb, (hidden_size,), dtype=jnp.float32) * 0.1

    ref = _reference(x, weight, bias)

    # Default (large, clamped) time tile, plus a deliberately small tile that
    # exercises the multi-step grid and the zero-padded tail path.
    out_default = jax.block_until_ready(spatial_attn(x, weight, bias))
    out_small = jax.block_until_ready(spatial_attn(x, weight, bias, tt=8))

    assert out_default.shape == (batch, channel_size, time_steps)
    assert jnp.allclose(out_default, ref, atol=1e-4, rtol=1e-4), "default-tile mismatch vs reference"
    assert jnp.allclose(out_small, ref, atol=1e-4, rtol=1e-4), "small-tile mismatch vs reference"

    print("KERNEL_OK")
</pallas_src>

<mosaic_0001>
module attributes {stable_mosaic.version = 11 : i64} {
  func.func @_spatial_attn_kernel(%arg0: i32, %arg1: memref<2x16x16xf32, #tpu.memory_space<vmem>>, %arg2: memref<16x16xf32, #tpu.memory_space<vmem>>, %arg3: memref<1x16xf32, #tpu.memory_space<vmem>>, %arg4: memref<2x16x16xf32, #tpu.memory_space<vmem>>) attributes {dimension_semantics = [#tpu.dimension_semantics<parallel>], iteration_bounds = array<i64: 2>, scalar_prefetch = 0 : i64, scratch_operands = 0 : i64, tpu.core_type = #tpu.core_type<tc>, window_params = [{transform_indices = @transform_0, window_bounds = array<i64: 2, 16, 16>}, {pipeline_mode = #tpu.pipeline_mode<synchronous>, transform_indices = @transform_1, window_bounds = array<i64: 16, 16>}, {pipeline_mode = #tpu.pipeline_mode<synchronous>, transform_indices = @transform_2, window_bounds = array<i64: 1, 16>}, {transform_indices = @transform_3, window_bounds = array<i64: 2, 16, 16>}]} {
    %c0 = arith.constant 0 : index
    %c0_0 = arith.constant 0 : index
    %0 = vector.load %arg2[%c0, %c0_0] : memref<16x16xf32, #tpu.memory_space<vmem>>, vector<16x16xf32>
    %c0_1 = arith.constant 0 : index
    %c0_2 = arith.constant 0 : index
    %1 = vector.load %arg3[%c0_1, %c0_2] : memref<1x16xf32, #tpu.memory_space<vmem>>, vector<1x16xf32>
    %c0_3 = arith.constant 0 : index
    %c0_4 = arith.constant 0 : index
    %c0_5 = arith.constant 0 : index
    %2 = vector.load %arg1[%c0_3, %c0_4, %c0_5] : memref<2x16x16xf32, #tpu.memory_space<vmem>>, vector<1x16x16xf32>
    %3 = vector.shape_cast %2 : vector<1x16x16xf32> to vector<16x16xf32>
    %c1 = arith.constant 1 : index
    %c0_6 = arith.constant 0 : index
    %c0_7 = arith.constant 0 : index
    %4 = vector.load %arg1[%c1, %c0_6, %c0_7] : memref<2x16x16xf32, #tpu.memory_space<vmem>>, vector<1x16x16xf32>
    %5 = vector.shape_cast %4 : vector<1x16x16xf32> to vector<16x16xf32>
    %cst = arith.constant dense<0.000000e+00> : vector<16x16xf32>
    %6 = tpu.matmul %3, %0, %cst {dimension_numbers = #tpu.dot_dimension_numbers<[1], [0], [0], [1], [0, 0, 1, 1], [], []>} : vector<16x16xf32>, vector<16x16xf32>, vector<16x16xf32> -> vector<16x16xf32>
    %7 = vector.broadcast %1 : vector<1x16xf32> to vector<16x16xf32>
    %8 = arith.addf %6, %7 : vector<16x16xf32>
    %cst_8 = arith.constant dense<0.000000e+00> : vector<16x16xf32>
    %9 = tpu.matmul %5, %0, %cst_8 {dimension_numbers = #tpu.dot_dimension_numbers<[1], [0], [0], [1], [0, 0, 1, 1], [], []>} : vector<16x16xf32>, vector<16x16xf32>, vector<16x16xf32> -> vector<16x16xf32>
    %10 = vector.broadcast %1 : vector<1x16xf32> to vector<16x16xf32>
    %11 = arith.addf %9, %10 : vector<16x16xf32>
    %12 = arith.maximumf %8, %11 : vector<16x16xf32>
    %13 = arith.subf %8, %12 : vector<16x16xf32>
    %14 = math.exp %13 : vector<16x16xf32>
    %15 = arith.subf %11, %12 : vector<16x16xf32>
    %16 = math.exp %15 : vector<16x16xf32>
    %17 = arith.addf %14, %16 : vector<16x16xf32>
    %cst_9 = arith.constant 1.000000e+00 : f32
    %18 = vector.broadcast %cst_9 : f32 to vector<16x16xf32>
    %19 = arith.divf %18, %17 : vector<16x16xf32>
    %20 = arith.mulf %14, %19 : vector<16x16xf32>
    %21 = arith.mulf %3, %20 : vector<16x16xf32>
    %c0_10 = arith.constant 0 : index
    %c0_11 = arith.constant 0 : index
    %c0_12 = arith.constant 0 : index
    %22 = vector.load %arg4[%c0_10, %c0_11, %c0_12] : memref<2x16x16xf32, #tpu.memory_space<vmem>>, vector<1x16x16xf32>
    %23 = vector.shape_cast %22 : vector<1x16x16xf32> to vector<16x16xf32>
    %24 = vector.shape_cast %21 : vector<16x16xf32> to vector<1x16x16xf32>
    tpu.vector_store %arg4[%c0_10, %c0_11, %c0_12], %24 {strides = array<i32>} : memref<2x16x16xf32, #tpu.memory_space<vmem>>, vector<1x16x16xf32>,
    %25 = arith.mulf %16, %19 : vector<16x16xf32>
    %26 = arith.mulf %5, %25 : vector<16x16xf32>
    %c1_13 = arith.constant 1 : index
    %c0_14 = arith.constant 0 : index
    %c0_15 = arith.constant 0 : index
    %27 = vector.load %arg4[%c1_13, %c0_14, %c0_15] : memref<2x16x16xf32, #tpu.memory_space<vmem>>, vector<1x16x16xf32>
    %28 = vector.shape_cast %27 : vector<1x16x16xf32> to vector<16x16xf32>
    %29 = vector.shape_cast %26 : vector<16x16xf32> to vector<1x16x16xf32>
    tpu.vector_store %arg4[%c1_13, %c0_14, %c0_15], %29 {strides = array<i32>} : memref<2x16x16xf32, #tpu.memory_space<vmem>>, vector<1x16x16xf32>,
    return
  }
  func.func @transform_0(%arg0: i32) -> (i32, i32, i32) {
    %c0_i32 = arith.constant 0 : i32
    %c0_i32_0 = arith.constant 0 : i32
    %c0_i32_1 = arith.constant 0 : i32
    return %c0_i32, %arg0, %c0_i32_0 : i32, i32, i32
  }
  func.func @transform_1(%arg0: i32) -> (i32, i32) {
    %c0_i32 = arith.constant 0 : i32
    %c0_i32_0 = arith.constant 0 : i32
    %c0_i32_1 = arith.constant 0 : i32
    return %c0_i32, %c0_i32_0 : i32, i32
  }
  func.func @transform_2(%arg0: i32) -> (i32, i32) {
    %c0_i32 = arith.constant 0 : i32
    %c0_i32_0 = arith.constant 0 : i32
    %c0_i32_1 = arith.constant 0 : i32
    return %c0_i32, %c0_i32_0 : i32, i32
  }
  func.func @transform_3(%arg0: i32) -> (i32, i32, i32) {
    %c0_i32 = arith.constant 0 : i32
    %c0_i32_0 = arith.constant 0 : i32
    %c0_i32_1 = arith.constant 0 : i32
    return %c0_i32, %arg0, %c0_i32_0 : i32, i32, i32
  }
}

</mosaic_0001>

<bundles_post_ra>
// kernel: spatial_attn.1
= control target key start
LH: loop header
LB: loop body
LE: loop exit
PB: predicated region body
PF: predicated region fallthrough
CT: control target
= control target key end

     0   :  { %s670_s12 = smov 0   ;;  %s672_s13 = smov 0   ;;  %s751_s0 = inlined_call_operand.vmem [shape: f32[2,32,16], index: 0, kind: input, shape index: {}]   ;;  %s752_s1 = inlined_call_operand.vmem [shape: f32[16,16], index: 1, kind: input, shape index: {}]   ;;  %s753_s2 = inlined_call_operand.vmem [shape: f32[1,16], index: 2, kind: input, shape index: {}]   ;;  %s754_s3 = inlined_call_operand.vmem [shape: f32[2,32,16], index: 3, kind: output, shape index: {}]  }
   0x1   :  { %s674_s14 = smov 0  }
   0x2 LB: > { %s534_s15 = sadd.s32 4294967295, %s648_s14   ;;  %s687_s16 = sadd.s32 1, %s648_s14   ;;  %s648_s14 = sphi %s674_s14, %s758_s14   ;;  %s644_s13 = sphi %s672_s13, %s757_s13   ;;  %s640_s12 = sphi %s670_s12, %s756_s12  }
   0x3   : > { %s17_s17 = ssub.s32 %s648_s14, %s687_s16  ;;  %s20_s18 = sadd.s32 1, %s644_s13 }
   0x4   : > { %p18_p0 = scmp.eq.s32.totalorder %s17_s17, 0  ;;  %p27_p1 = scmp.ne.s32.totalorder %s644_s13, %s640_s12 }
   0x5   : > { %p28_p2 = scmp.eq.s32.totalorder %s648_s14, 0  ;;  %p99_p3 = scmp.eq.s32.totalorder %s534_s15, 1 }
   0x6   : > { %s698_s19 = scalar_select %p18_p0, %s644_s13, %s20_s18  }
   0x7   : > { %p29_p4 = por %p28_p2, %p27_p1  ;;  %p700_p5 = por %p99_p3, %p27_p1 }
   0x8   : > { %p537_p6 = scmp.ge.s32.totalorder %s648_s14, 2 }
   0xa   : > { %127 = sbr.rel (%p537_p6) target bundleno = 24 (0x18), region = 24 }
  0x11   : > { %130 = sbr.rel (!%p29_p4) target bundleno = 24 (0x18), region = 28  ;;  %s132_s21 = sand.u32 (%p29_p4), 1, %s644_s13  }
  0x12   : > { %s558_s22 = sshll.u32 (%p29_p4), %s648_s14, 4  ;;  %s538_s23 = sshll.u32 (%p29_p4), %s132_s21, 5 }
  0x13   : > { %s137_s26 = scalar_lea.vmem (%p29_p4), %s751_s0, %s558_s22  ;;  %s134_s27 = scalar_lea.vmem (%p29_p4), [#allocation2], %s538_s23 }
  0x14   : > { %v171_v0 = vld [vmem:[%s137_s26] sm:$0xff] (%p29_p4)  ;;  %v173_v1 = vld [vmem:[%s137_s26 + $0x8] sm:$0xff] (%p29_p4) }
  0x15   : > { %v175_v2 = vld [vmem:[%s137_s26 + $0x20] sm:$0xff] (%p29_p4)  ;;  %172 = vst [vmem:[%s134_s27] sm:$0xff] (%p29_p4), %v171_v0  ;;  %174 = vst [vmem:[%s134_s27 + $0x8] sm:$0xff] (%p29_p4), %v173_v1  ;;  %v177_v3 = vld [vmem:[%s137_s26 + $0x28] sm:$0xff] (%p29_p4) }
  0x16   : > { %176 = vst [vmem:[%s134_s27 + $0x10] sm:$0xff] (%p29_p4), %v175_v2  ;;  %178 = vst [vmem:[%s134_s27 + $0x18] sm:$0xff] (%p29_p4), %v177_v3 }
  0x18 PF: > { %p541_p7 = scmp.ge.s32.totalorder %s648_s14, 1  ;;  %p183_p8 = scmp.lt.s32.totalorder %s648_s14, 3 }
  0x1a   : > { %p184_p9 = pnand %p541_p7, %p183_p8 }
  0x1b   : > { %v214_v4 = vld [vmem:[%s752_s1] sm:$0xff] (!%p184_p9)  ;;  %v215_v5 = vld [vmem:[%s752_s1 + $0x8] sm:$0xff] (!%p184_p9)  ;;  %s190_s5 = sand.u32 (!%p184_p9), 1, %s640_s12   ;;  %vm228_vm0 = vcmask (!%p184_p9), 130048  }
  0x1c   : > { %187 = sbr.rel (%p184_p9) target bundleno = 294 (0x126), region = 66  ;;  %v582_v6 = vpack.c.bf16 (!%p184_p9), %v215_v5, %v214_v4  ;;  %s719_s6 = sshll.u32 (!%p184_p9), %s190_s5, 5  ;;  %v546_v11 = vld [vmem:[%s753_s2] ss:$0 sm:$0xff] (!%p184_p9) }
  0x1d   : > { %s192_s7 = scalar_lea.vmem (!%p184_p9), [#allocation2], %s719_s6  ;;  %s211_s10 = scalar_lea.vmem (!%p184_p9), [#allocation3], %s719_s6 }
  0x1e   : > { %583 = vmatprep.subr.bf16.mxu0 (!%p184_p9), %v582_v6  ;;  %587 = vmatprep.subr.bf16.mxu1 (!%p184_p9), %v582_v6  ;;  %v217_v7 = vld [vmem:[%s192_s7] sm:$0xff] (!%p184_p9)  ;;  %v544_v8 = vld [vmem:[%s192_s7 + $0x10] sm:$0xff] (!%p184_p9)  ;;  %v218_v9 = vld [vmem:[%s192_s7 + $0x8] sm:$0xff] (!%p184_p9) }
  0x1f   : > { %585 = vmatpush3.bf16.msra.mxu0 (!%p184_p9), %v582_v6  ;;  %589 = vmatpush3.bf16.msra.mxu1 (!%p184_p9), %v582_v6  ;;  %v545_v10 = vld [vmem:[%s192_s7 + $0x18] sm:$0xff] (!%p184_p9) }
  0x20   : > { %572 = vmatprep.mubr.msk.f32.mxu0 (!%p184_p9), %vm228_vm0, %v217_v7  ;;  %579 = vmatprep.mubr.msk.f32.mxu1 (!%p184_p9), %vm228_vm0, %v544_v8 }
  0x22   : > { %573 = vmatmul.mubr.msk.f32.vlgmr.msra.gmra.mrb[0].mxu0 (!%p184_p9), %vm228_vm0, %v218_v9  ;;  %580 = vmatmul.mubr.msk.f32.vlgmr.msra.gmra.mrb[0].mxu1 (!%p184_p9), %vm228_vm0, %v545_v10 }
  0x23   : > { %s559_s11 = sshll.u32 (%p700_p5), %s534_s15, 4 }
  0x24   : > { %s433_s18 = scalar_lea.vmem (%p700_p5), %s754_s3, %s559_s11 }
  0xf5   : > { %v574_v12 = vpop.f32.mrb[0].mxu0  ;;  %v581_v13 = vpop.f32.mrb[0].mxu1 }
  0xf6   : > { %v307_v14 = vadd.f32 %v574_v12, %v546_v11  ;;  %v388_v15 = vadd.f32 %v581_v13, %v546_v11  ;;  %v301_v16 = vpop.f32.mrb[1].mxu0  ;;  %v382_v17 = vpop.f32.mrb[1].mxu1 }
  0xf7   : > { %v302_v18 = vadd.f32 %v546_v11, %v301_v16  ;;  %v383_v19 = vadd.f32 %v546_v11, %v382_v17 }
  0xf8   : > { %v392_v20 = vmax.f32 %v307_v14, %v388_v15 }
  0xf9   : > { %v391_v21 = vmax.f32 %v302_v18, %v383_v19 }
  0xfa   : > { %v394_v22 = vsub.f32 %v307_v14, %v392_v20  ;;  %v400_v23 = vsub.f32 %v388_v15, %v392_v20 }
  0xfb   : > { %v393_v24 = vsub.f32 %v302_v18, %v391_v21  ;;  %v399_v25 = vsub.f32 %v383_v19, %v391_v21 }
  0xfc   : > { %v397_v26 = vmul.f32 1.442695, %v394_v22  ;;  %v403_v27 = vmul.f32 1.442695, %v400_v23 }
  0xfd   : > { %v395_v28 = vmul.f32 1.442695, %v393_v24  ;;  %v401_v29 = vmul.f32 1.442695, %v399_v25 }
  0xfe   : > { %614 = vpow2.f32 %v397_v26 }
  0xff   : > { %616 = vpow2.f32 %v403_v27 }
 0x100   : > { %618 = vpow2.f32 %v395_v28 }
 0x101   : > { %620 = vpow2.f32 %v401_v29 }
 0x108   : > { %v615_v30 = vpop.eup %614 }
 0x109   : > { %v617_v31 = vpop.eup %616 }
 0x10a   : > { %v619_v32 = vpop.eup %618  ;;  %v406_v33 = vadd.f32 %v617_v31, %v615_v30 }
 0x10b   : > { %v621_v34 = vpop.eup %620 }
 0x10c   : > { %622 = vrcp.f32 %v406_v33  ;;  %v405_v35 = vadd.f32 %v621_v34, %v619_v32 }
 0x10e   : > { %624 = vrcp.f32 %v405_v35 }
 0x116   : > { %v623_v36 = vpop.eup %622 }
 0x117   : > { %v412_v37 = vmul.f32 %v623_v36, %v615_v30  ;;  %v418_v38 = vmul.f32 %v623_v36, %v617_v31  ;;  %430 = sbr.rel (!%p700_p5) target bundleno = 294 (0x126), region = 74 }
 0x118   : > { %v625_v39 = vpop.eup %624 }
 0x119   : > { %v414_v40 = vmul.f32 %v412_v37, %v218_v9  ;;  %v420_v41 = vmul.f32 %v545_v10, %v418_v38  ;;  %v411_v42 = vmul.f32 %v625_v39, %v619_v32  ;;  %v417_v43 = vmul.f32 %v625_v39, %v621_v34 }
 0x11b   : > { %416 = vst.msk [vmem:[%s211_s10 + $0x8] sm:$0xff] %vm228_vm0, %v414_v40  ;;  %552 = vst.msk [vmem:[%s211_s10 + $0x18] sm:$0xff] %vm228_vm0, %v420_v41  ;;  %v413_v44 = vmul.f32 %v411_v42, %v217_v7  ;;  %v419_v45 = vmul.f32 %v544_v8, %v417_v43 }
 0x11d   : > { %415 = vst.msk [vmem:[%s211_s10] sm:$0xff] %vm228_vm0, %v413_v44  ;;  %551 = vst.msk [vmem:[%s211_s10 + $0x10] sm:$0xff] %vm228_vm0, %v419_v45 }
 0x122   : > { %v469_v47 = vld [vmem:[%s211_s10 + $0x8] sm:$0xff]  ;;  %v473_v49 = vld [vmem:[%s211_s10 + $0x18] sm:$0xff] }
 0x123   : > { %470 = vst [vmem:[%s433_s18 + $0x8] sm:$0xff] %v469_v47  ;;  %474 = vst [vmem:[%s433_s18 + $0x28] sm:$0xff] %v473_v49 }
 0x124   : > { %v467_v46 = vld [vmem:[%s211_s10] sm:$0xff]  ;;  %v471_v48 = vld [vmem:[%s211_s10 + $0x10] sm:$0xff] }
 0x125   : > { %468 = vst [vmem:[%s433_s18] sm:$0xff] %v467_v46  ;;  %472 = vst [vmem:[%s433_s18 + $0x20] sm:$0xff] %v471_v48 }
 0x126 PF: > { %p10_p10 = scmp.ge.s32.totalorder %s687_s16, 4   ;;  %s756_s12 = smov %s644_s13 }
 0x127   : > { %s757_s13 = smov %s698_s19  ;;  %s758_s14 = smov %s687_s16 }
 0x128   :  { %12 = sbr.rel (!%p10_p10) target bundleno = 2 (0x2), region = 145 }

</bundles_post_ra>
